<compile_context>
chip_gen: v5e
topology: v5e:2x2
jax: 0.10.0
libtpu: 0.0.40
codegen_flags: <defaults>
</compile_context>

<pallas_src>
import math
import jax
import jax.numpy as jnp
from jax.experimental import pallas as pl
from jax.experimental.pallas import tpu as pltpu

N_NODES = 7
F_IN = 16
H1 = 8
H2 = 8
F_STACK_IN = N_NODES * F_IN   # 112  (stacked node features per sample)
F_FLAT = N_NODES * H2         # 56   (flattened GCN output per sample)
F_MID = 24

MAX_B_TILE = 2048             # samples per grid step (lane-aligned)

# Column offsets of the sub-blocks inside the packed weight slab (each 128-lane aligned
# so every in-kernel slice stays inside a single lane tile).
_K1_COL = 0                   # (56, 112)  A_hat (x) W1^T
_K2_COL = 128                 # (56, 56)   A_hat (x) W2^T
_W3_COL = 256                 # (24, 56)   Linear(56, 24) weight
_W4_COL = 384                 # (1, 24)    Linear(24, 1) weight
_W_COLS = 512


def _round_up(x, m):
    return ((x + m - 1) // m) * m


def gcn_kernel(x_ref, w_ref, b_ref, o_ref):
    """One batch tile; batch stays on the lane dimension of all intermediates.

    x_ref : (Bt, 112)  natural input layout: x[b, j*16 + c]
    w_ref : (56, 512)  packed bf16 weights (see _*_COL offsets)
    b_ref : (56, 4)    packed f32 biases: [b1_stack | b2_stack | b3(pad) | b4(pad)]
    o_ref : (1, Bt)    lane-dense output row (final bias already added)
    """
    x = x_ref[...].astype(jnp.bfloat16)                       # (Bt, 112)

    k1 = w_ref[:, _K1_COL:_K1_COL + F_STACK_IN]               # (56, 112) bf16
    k2 = w_ref[:, _K2_COL:_K2_COL + F_FLAT]                   # (56, 56)  bf16
    w3 = w_ref[0:F_MID, _W3_COL:_W3_COL + F_FLAT]             # (24, 56)  bf16
    w4 = w_ref[0:1, _W4_COL:_W4_COL + F_MID]                  # (1, 24)   bf16

    b1 = b_ref[:, 0:1]                                        # (56, 1) f32
    b2 = b_ref[:, 1:2]                                        # (56, 1) f32
    b3 = b_ref[0:F_MID, 2:3]                                  # (24, 1) f32
    b4 = b_ref[0:1, 3:4]                                      # (1, 1)  f32

    # GCNConv 1: (A_hat (x) W1^T) @ x^T, contracting the shared 112-feature axis
    # directly (no materialized transpose); result (56, Bt) is lane-dense in batch.
    h = jax.lax.dot_general(k1, x, (((1,), (1,)), ((), ())),
                            preferred_element_type=jnp.float32) + b1
    h = jnp.maximum(h, 0.0).astype(jnp.bfloat16)              # (56, Bt)

    # GCNConv 2
    h = jnp.dot(k2, h, preferred_element_type=jnp.float32) + b2
    h = jnp.maximum(h, 0.0).astype(jnp.bfloat16)              # (56, Bt)

    # Flatten(7,8) + Linear(56, 24) + ReLU (rows of h are already flat: j*8 + f)
    z = jnp.dot(w3, h, preferred_element_type=jnp.float32) + b3
    z = jnp.maximum(z, 0.0).astype(jnp.bfloat16)              # (24, Bt)

    # Linear(24, 1) with the final bias folded into the store.
    o_ref[...] = jnp.dot(w4, z, preferred_element_type=jnp.float32) + b4


def normalized_adj(edge_index, num_nodes):
    """Dense D^{-1/2}(A+I)D^{-1/2}, matching PyG GCNConv's gcn_norm."""
    src = edge_index[0]
    dst = edge_index[1]
    a = jnp.zeros((num_nodes, num_nodes), jnp.float32).at[dst, src].add(1.0)
    a = a + jnp.eye(num_nodes, dtype=jnp.float32)       # add self loops
    deg = jnp.sum(a, axis=1)                            # degree incl. self loop
    d_inv_sqrt = jnp.where(deg > 0.0, 1.0 / jnp.sqrt(deg), 0.0)
    return a * d_inv_sqrt[:, None] * d_inv_sqrt[None, :]


def init_params(key):
    k = jax.random.split(key, 6)

    def glorot(rng, shape):
        limit = math.sqrt(6.0 / (shape[0] + shape[1]))
        return jax.random.uniform(rng, shape, jnp.float32, -limit, limit)

    w1 = glorot(k[0], (F_IN, H1))          # GCNConv(16, 8) weight
    b1 = jnp.zeros((H1,), jnp.float32)
    w2 = glorot(k[1], (H1, H2))            # GCNConv(8, 8) weight
    b2 = jnp.zeros((H2,), jnp.float32)
    w3t = glorot(k[2], (F_FLAT, F_MID))    # Linear(56, 24), stored transposed
    b3 = jax.random.uniform(k[3], (F_MID,), jnp.float32, -0.1, 0.1)
    w4t = glorot(k[4], (F_MID, 1))         # Linear(24, 1), stored transposed
    b4 = jax.random.uniform(k[5], (1,), jnp.float32, -0.1, 0.1)

    # TODO(synk): miu_w / sigma_w / gamma exist in the module but are unused in forward().
    miu_w = jnp.array([1.75], jnp.float32)
    sigma_w = jnp.array([0.5], jnp.float32)
    gamma = jnp.array([0.0], jnp.float32)
    _ = (miu_w, sigma_w, gamma)

    return (w1, b1, w2, b2, w3t, b3, w4t, b4)


def _pack_operands(edge_index, params):
    """Fold the graph aggregation into the weights and pack everything into 2 slabs."""
    a_hat = normalized_adj(edge_index, N_NODES)               # (7, 7)
    w1, b1, w2, b2, w3t, b3, w4t, b4 = params

    k1 = jnp.kron(a_hat, w1.T)                                # (56, 112)
    k2 = jnp.kron(a_hat, w2.T)                                # (56, 56)
    w3r = w3t.T                                               # (24, 56)
    w4r = w4t.T                                               # (1, 24)

    w_slab = jnp.zeros((F_FLAT, _W_COLS), jnp.float32)
    w_slab = w_slab.at[:, _K1_COL:_K1_COL + F_STACK_IN].set(k1)
    w_slab = w_slab.at[:, _K2_COL:_K2_COL + F_FLAT].set(k2)
    w_slab = w_slab.at[0:F_MID, _W3_COL:_W3_COL + F_FLAT].set(w3r)
    w_slab = w_slab.at[0:1, _W4_COL:_W4_COL + F_MID].set(w4r)
    w_slab = w_slab.astype(jnp.bfloat16)                      # bf16 MXU operands

    b_slab = jnp.zeros((F_FLAT, 4), jnp.float32)
    b_slab = b_slab.at[:, 0].set(jnp.tile(b1, N_NODES))
    b_slab = b_slab.at[:, 1].set(jnp.tile(b2, N_NODES))
    b_slab = b_slab.at[0:F_MID, 2].set(b3)
    b_slab = b_slab.at[0, 3].set(b4[0])
    return w_slab, b_slab


def gcn_forward(x, edge_index, params, *, b_tile=MAX_B_TILE):
    x = jnp.asarray(x, jnp.float32).reshape(-1, F_STACK_IN)   # (batch, 112), no pad
    batch = x.shape[0]

    # Batch-tile selection:
    #  * batch <= 128: a single full-extent block (always a legal BlockSpec).
    #  * otherwise: lane-aligned (multiple-of-128) tiles, capped at b_tile, and at least
    #    2 tiles so the "parallel" batch axis shards across both v7x TensorCores.
    #    The ragged last block is handled by Pallas (padding lanes are independent and
    #    their outputs are never written back).
    if batch <= 128:
        bt = batch
    else:
        bt = min(b_tile, _round_up(pl.cdiv(batch, 2), 128))
        bt = max(128, _round_up(bt, 128))
    num_tiles = pl.cdiv(batch, bt)

    w_slab, b_slab = _pack_operands(edge_index, params)

    out_row = pl.pallas_call(
        gcn_kernel,
        out_shape=jax.ShapeDtypeStruct((1, batch), jnp.float32),
        grid=(num_tiles,),
        in_specs=[
            pl.BlockSpec((bt, F_STACK_IN), lambda t: (t, 0)),   # x tile, natural layout
            pl.BlockSpec((F_FLAT, _W_COLS), lambda t: (0, 0)),  # packed bf16 weights
            pl.BlockSpec((F_FLAT, 4), lambda t: (0, 0)),        # packed f32 biases
        ],
        out_specs=pl.BlockSpec((1, bt), lambda t: (0, t)),      # lane-dense output row
        compiler_params=pltpu.CompilerParams(
            dimension_semantics=("parallel",)),
    )(x, w_slab, b_slab)

    return out_row.reshape(batch, 1)


def gcn_forward_ref(x, edge_index, params):
    """Pure-JAX f32 reference of the module's forward, for a correctness check."""
    x = jnp.asarray(x, jnp.float32).reshape(-1, N_NODES, F_IN)
    a_hat = normalized_adj(edge_index, N_NODES)
    w1, b1, w2, b2, w3t, b3, w4t, b4 = params
    h = jax.nn.relu(jnp.einsum('ij,bjf->bif', a_hat, x) @ w1 + b1)
    h = jax.nn.relu(jnp.einsum('ij,bjf->bif', a_hat, h) @ w2 + b2)
    h = h.reshape(h.shape[0], F_FLAT)
    z = jax.nn.relu(h @ w3t + b3)
    return z @ w4t + b4


if __name__ == "__main__":
    key = jax.random.PRNGKey(0)
    k_param, k_x, k_x2 = jax.random.split(key, 3)

    params = init_params(k_param)

    # Deterministic edge_index: undirected ring over the 7 nodes (14 directed edges).
    src = jnp.array([i for i in range(N_NODES)] +
                    [(i + 1) % N_NODES for i in range(N_NODES)], jnp.int32)
    dst = jnp.array([(i + 1) % N_NODES for i in range(N_NODES)] +
                    [i for i in range(N_NODES)], jnp.int32)
    edge_index = jnp.stack([src, dst], axis=0)          # (2, 14)

    # bf16 MXU operands (f32 accumulation) vs the f32 reference => loosened tolerance
    # (review: expect ~1e-2 relative after two GCN layers + two dense layers).
    TOL = dict(atol=1e-1, rtol=1e-1)

    # Small test: batch=2 samples of 7*16 = 112 features (single full-extent block).
    x = jax.random.normal(k_x, (2, 112), jnp.float32)
    out = jax.block_until_ready(gcn_forward(x, edge_index, params))
    ref = jax.block_until_ready(gcn_forward_ref(x, edge_index, params))
    assert out.shape == (2, 1)
    assert jnp.allclose(out, ref, **TOL)

    # Multi-tile path: batch=300 with an explicit 128-sample tile (3 grid steps,
    # ragged last block, no wrapper-side padding).
    x2 = jax.random.normal(k_x2, (300, 112), jnp.float32)
    out2 = jax.block_until_ready(gcn_forward(x2, edge_index, params, b_tile=128))
    ref2 = jax.block_until_ready(gcn_forward_ref(x2, edge_index, params))
    assert out2.shape == (300, 1)
    assert jnp.allclose(out2, ref2, **TOL)

    # Default tiling path (>=2 tiles for v7x megacore): batch=300 without the cap.
    out3 = jax.block_until_ready(gcn_forward(x2, edge_index, params))
    assert out3.shape == (300, 1)
    assert jnp.allclose(out3, ref2, **TOL)

    print("KERNEL_OK")
</pallas_src>

<mosaic_0001>
module attributes {stable_mosaic.version = 11 : i64} {
  func.func @gcn_kernel(%arg0: i32, %arg1: memref<2x112xf32, #tpu.memory_space<vmem>>, %arg2: memref<56x512xbf16, #tpu.memory_space<vmem>>, %arg3: memref<56x4xf32, #tpu.memory_space<vmem>>, %arg4: memref<1x2xf32, #tpu.memory_space<vmem>>) attributes {dimension_semantics = [#tpu.dimension_semantics<parallel>], iteration_bounds = array<i64: 1>, scalar_prefetch = 0 : i64, scratch_operands = 0 : i64, tpu.core_type = #tpu.core_type<tc>, window_params = [{transform_indices = @transform_0, window_bounds = array<i64: 2, 112>}, {pipeline_mode = #tpu.pipeline_mode<synchronous>, transform_indices = @transform_1, window_bounds = array<i64: 56, 512>}, {pipeline_mode = #tpu.pipeline_mode<synchronous>, transform_indices = @transform_2, window_bounds = array<i64: 56, 4>}, {transform_indices = @transform_3, window_bounds = array<i64: 1, 2>}]} {
    %c0 = arith.constant 0 : index
    %c0_0 = arith.constant 0 : index
    %0 = vector.load %arg1[%c0, %c0_0] : memref<2x112xf32, #tpu.memory_space<vmem>>, vector<2x112xf32>
    %1 = arith.truncf %0 : vector<2x112xf32> to vector<2x112xbf16>
    %c0_1 = arith.constant 0 : index
    %c0_2 = arith.constant 0 : index
    %2 = vector.load %arg2[%c0_1, %c0_2] : memref<56x512xbf16, #tpu.memory_space<vmem>>, vector<56x112xbf16>
    %c0_3 = arith.constant 0 : index
    %c128 = arith.constant 128 : index
    %3 = vector.load %arg2[%c0_3, %c128] : memref<56x512xbf16, #tpu.memory_space<vmem>>, vector<56x56xbf16>
    %c0_4 = arith.constant 0 : index
    %c256 = arith.constant 256 : index
    %4 = vector.load %arg2[%c0_4, %c256] : memref<56x512xbf16, #tpu.memory_space<vmem>>, vector<24x56xbf16>
    %c0_5 = arith.constant 0 : index
    %c384 = arith.constant 384 : index
    %5 = vector.load %arg2[%c0_5, %c384] : memref<56x512xbf16, #tpu.memory_space<vmem>>, vector<1x24xbf16>
    %c0_6 = arith.constant 0 : index
    %c0_7 = arith.constant 0 : index
    %6 = vector.load %arg3[%c0_6, %c0_7] : memref<56x4xf32, #tpu.memory_space<vmem>>, vector<56x1xf32>
    %c0_8 = arith.constant 0 : index
    %c1 = arith.constant 1 : index
    %7 = vector.load %arg3[%c0_8, %c1] : memref<56x4xf32, #tpu.memory_space<vmem>>, vector<56x1xf32>
    %c0_9 = arith.constant 0 : index
    %c2 = arith.constant 2 : index
    %8 = vector.load %arg3[%c0_9, %c2] : memref<56x4xf32, #tpu.memory_space<vmem>>, vector<24x1xf32>
    %c0_10 = arith.constant 0 : index
    %c3 = arith.constant 3 : index
    %9 = vector.load %arg3[%c0_10, %c3] : memref<56x4xf32, #tpu.memory_space<vmem>>, vector<1x1xf32>
    %cst = arith.constant dense<0.000000e+00> : vector<56x2xf32>
    %10 = tpu.matmul %2, %1, %cst {dimension_numbers = #tpu.dot_dimension_numbers<[1], [1], [0], [0], [0, 0, 1, 0], [], []>} : vector<56x112xbf16>, vector<2x112xbf16>, vector<56x2xf32> -> vector<56x2xf32>
    %11 = vector.broadcast %6 : vector<56x1xf32> to vector<56x2xf32>
    %12 = arith.addf %10, %11 : vector<56x2xf32>
    %cst_11 = arith.constant 0.000000e+00 : f32
    %13 = vector.broadcast %cst_11 : f32 to vector<56x2xf32>
    %14 = arith.maximumf %12, %13 : vector<56x2xf32>
    %15 = arith.truncf %14 : vector<56x2xf32> to vector<56x2xbf16>
    %cst_12 = arith.constant dense<0.000000e+00> : vector<56x2xf32>
    %16 = tpu.matmul %3, %15, %cst_12 {dimension_numbers = #tpu.dot_dimension_numbers<[1], [0], [0], [1], [0, 0, 1, 1], [], []>} : vector<56x56xbf16>, vector<56x2xbf16>, vector<56x2xf32> -> vector<56x2xf32>
    %17 = vector.broadcast %7 : vector<56x1xf32> to vector<56x2xf32>
    %18 = arith.addf %16, %17 : vector<56x2xf32>
    %cst_13 = arith.constant 0.000000e+00 : f32
    %19 = vector.broadcast %cst_13 : f32 to vector<56x2xf32>
    %20 = arith.maximumf %18, %19 : vector<56x2xf32>
    %21 = arith.truncf %20 : vector<56x2xf32> to vector<56x2xbf16>
    %cst_14 = arith.constant dense<0.000000e+00> : vector<24x2xf32>
    %22 = tpu.matmul %4, %21, %cst_14 {dimension_numbers = #tpu.dot_dimension_numbers<[1], [0], [0], [1], [0, 0, 1, 1], [], []>} : vector<24x56xbf16>, vector<56x2xbf16>, vector<24x2xf32> -> vector<24x2xf32>
    %23 = vector.broadcast %8 : vector<24x1xf32> to vector<24x2xf32>
    %24 = arith.addf %22, %23 : vector<24x2xf32>
    %cst_15 = arith.constant 0.000000e+00 : f32
    %25 = vector.broadcast %cst_15 : f32 to vector<24x2xf32>
    %26 = arith.maximumf %24, %25 : vector<24x2xf32>
    %27 = arith.truncf %26 : vector<24x2xf32> to vector<24x2xbf16>
    %cst_16 = arith.constant dense<0.000000e+00> : vector<1x2xf32>
    %28 = tpu.matmul %5, %27, %cst_16 {dimension_numbers = #tpu.dot_dimension_numbers<[1], [0], [0], [1], [0, 0, 1, 1], [], []>} : vector<1x24xbf16>, vector<24x2xbf16>, vector<1x2xf32> -> vector<1x2xf32>
    %29 = vector.broadcast %9 : vector<1x1xf32> to vector<1x2xf32>
    %30 = arith.addf %28, %29 : vector<1x2xf32>
    %c0_17 = arith.constant 0 : index
    %c0_18 = arith.constant 0 : index
    %31 = vector.load %arg4[%c0_17, %c0_18] : memref<1x2xf32, #tpu.memory_space<vmem>>, vector<1x2xf32>
    tpu.vector_store %arg4[%c0_17, %c0_18], %30 {strides = array<i32>} : memref<1x2xf32, #tpu.memory_space<vmem>>, vector<1x2xf32>,
    return
  }
  func.func @transform_0(%arg0: i32) -> (i32, i32) {
    %c0_i32 = arith.constant 0 : i32
    %c0_i32_0 = arith.constant 0 : i32
    return %arg0, %c0_i32 : i32, i32
  }
  func.func @transform_1(%arg0: i32) -> (i32, i32) {
    %c0_i32 = arith.constant 0 : i32
    %c0_i32_0 = arith.constant 0 : i32
    %c0_i32_1 = arith.constant 0 : i32
    return %c0_i32, %c0_i32_0 : i32, i32
  }
  func.func @transform_2(%arg0: i32) -> (i32, i32) {
    %c0_i32 = arith.constant 0 : i32
    %c0_i32_0 = arith.constant 0 : i32
    %c0_i32_1 = arith.constant 0 : i32
    return %c0_i32, %c0_i32_0 : i32, i32
  }
  func.func @transform_3(%arg0: i32) -> (i32, i32) {
    %c0_i32 = arith.constant 0 : i32
    %c0_i32_0 = arith.constant 0 : i32
    return %c0_i32, %arg0 : i32, i32
  }
}

</mosaic_0001>

<bundles_post_ra>
// kernel: tpu_custom_call.1
= control target key start
LH: loop header
LB: loop body
LE: loop exit
PB: predicated region body
PF: predicated region fallthrough
CT: control target
= control target key end

     0   :  { %8 = vsyncpa [#allocation3], 0  ;;  %s582_s0 = inlined_call_operand.vmem [shape: f32[2,112], index: 0, kind: input, shape index: {}]   ;;  %s583_s1 = inlined_call_operand.hbm [shape: bf16[56,512], index: 1, kind: input, shape index: {}]   ;;  %s584_s2 = inlined_call_operand.vmem [shape: f32[56,4], index: 2, kind: input, shape index: {}]   ;;  %s585_s3 = inlined_call_operand.hbm [shape: f32[1,2], index: 3, kind: output, shape index: {}]  }
   0x1   :  { %9 = vsyncpa [#allocation4], 0  ;;  %s16_s14 = sshll.u32 %s583_s1, 4  ;;  %s488_s15 = smov [#allocation2]   ;;  %s17_s14 = int_to_ptr.hbm [resolvable:$true] %s16_s14 }
   0x2   :  { %s18_s16 = sshll.u32 %s488_s15, 4  ;;  %s489_s17 = smov 256   ;;  %s19_s16 = int_to_ptr.vmem [resolvable:$true] %s18_s16 }
   0x3   :  { %s490_s18 = smov 16  }
   0x4   :  { %24 = dma.hbm_to_vmem [thread:$0]  %s17_s14, 1792, %s19_s16, [#allocation3], %s489_s17, %s489_s17, %s490_s18  }
   0x5   :  { %484 = dma.done.wait [#allocation3], 1792  }
   0x6   :  { %485 = vsyncadd [#allocation3], 4294965504  ;;  %v491_v0 = vmov 0   ;;  %v32_v1 = vld [vmem:[%s582_s0] sm:$0x3]  ;;  %vm113_vm0 = vcmask 916480  }
   0x7   :  { %425 = vset.pattern.permute.xlu0 %v491_v0  ;;  %426 = vset.pattern.permute.xlu1 %v491_v0  ;;  %v33_v2 = vpack.c.bf16 %v32_v1, %v32_v1  ;;  %v58_v3 = vld [vmem:[%s584_s2 + $0x30] sm:$0xff]  ;;  %v57_v4 = vld [vmem:[%s584_s2 + $0x28] sm:$0xff]  ;;  %v529_v6 = vld [vmem:[#allocation2 + $0x60] sm:$0xff]   ;;  %vm227_vm1 = vcmask 1043456   ;;  %v492_v33 = vmov 1   ;;  %vm214_vm2 = vcmask 457728  }
   0x8   :  { %427 = vset.pattern.permute.xlu2 %v491_v0  ;;  %92 = vperm.xlu0 %425, %v58_v3   ;;  %v55_v7 = vld [vmem:[%s584_s2 + $0x18] sm:$0xff]  ;;  %v368_v8 = vld [vmem:[#allocation2] sm:$0xf]  ;;  %v405_v9 = vld [vmem:[#allocation2 + $0xc] sm:$0xf0]  ;;  %v108_v10 = vunpack.c.l.b16 %v529_v6  ;;  %v209_v56 = vunpack.c.h.b16 %v529_v6  ;;  %vm327_vm3 = vcmask 195584  }
   0x9   :  { %v127_v5 = vsel %vm113_vm0, %v33_v2, 0  ;;  %87 = vperm.xlu1 %426, %v57_v4   ;;  %77 = vperm.xlu2 %427, %v55_v7   ;;  %v369_v11 = vor.u32 %v405_v9, %v368_v8  ;;  %v56_v12 = vld [vmem:[%s584_s2 + $0x20] sm:$0xff]  ;;  %v541_v14 = vld [vmem:[%s584_s2 + $0x10] sm:$0xff]  ;;  %v555_v16 = vld [vmem:[%s584_s2 + $0x8] sm:$0xff]  ;;  %s356_s11 = sshll.u32 %s585_s3, 4  ;;  %vm347_vm4 = vcmask 8192   ;;  %s357_s11 = int_to_ptr.hbm [resolvable:$true] %s356_s11 }
   0xa   :  { %136 = vmatpush.bf16.xpose.msra.mxu0 %v127_v5  ;;  %412 = vmatpush.bf16.xpose.msra.mxu2 %v127_v5  ;;  %v112_v13 = vpack.c.b16 %v108_v10, %v108_v10  ;;  %v548_v15 = vld [vmem:[%s584_s2] sm:$0xff]  ;;  %v406_v18 = vld [vmem:[#allocation2 + $0x2c] sm:$0xf0]  ;;  %v408_v59 = vld [vmem:[#allocation2 + $0x10] sm:$0xf0]  ;;  %v213_v62 = vpack.c.b16 %v209_v56, %v209_v56 }
   0xb   :  { %v372_v17 = vld [vmem:[#allocation2 + $0x20] sm:$0xf]  ;;  %v407_v21 = vld [vmem:[#allocation2 + $0x4c] sm:$0xf0]  ;;  %v384_v58 = vld [vmem:[#allocation2 + $0x4] sm:$0xf] }
   0xc   :  { %v373_v19 = vor.u32 %v406_v18, %v372_v17  ;;  %v376_v20 = vld [vmem:[#allocation2 + $0x40] sm:$0xf]  ;;  %v385_v61 = vor.u32 %v408_v59, %v384_v58  ;;  %v388_v63 = vld [vmem:[#allocation2 + $0x24] sm:$0xf]  ;;  %v409_v0 = vld [vmem:[#allocation2 + $0x30] sm:$0xf0] }
   0xd   :  { %v377_v22 = vor.u32 %v407_v21, %v376_v20  ;;  %v389_v1 = vor.u32 %v409_v0, %v388_v63  ;;  %v392_v2 = vld [vmem:[#allocation2 + $0x44] sm:$0xf]  ;;  %v493_v20 = vmov 2   ;;  %v51_v0 = vld [vmem:[#allocation2 + $0xc] sm:$0x1] }
  0x10   :  { %82 = vperm.xlu0 %425, %v56_v12  }
  0x11   :  { %378 = vmatmul.msk.bf16.vlgmr.msra.gmra.mxu0 %vm113_vm0, %v369_v11  ;;  %381 = vmatmul.msk.bf16.vlgmr.msra.gmra.mxu2 %vm113_vm0, %v112_v13 }
  0x12   :  { %72 = vperm.xlu1 %426, %v541_v14   ;;  %62 = vperm.xlu2 %427, %v548_v15  }
  0x18   :  { %67 = vperm.xlu0 %425, %v555_v16  }
  0x1a   :  { %428 = vset.pattern.permute.xlu1 %v492_v33  ;;  %429 = vset.pattern.permute.xlu2 %v492_v33 }
  0x1b   :  { %193 = vperm.xlu1 %428, %v58_v3   ;;  %185 = vperm.xlu2 %429, %v56_v12   ;;  %v410_v3 = vld [vmem:[#allocation2 + $0x50] sm:$0xf0] }
  0x20   :  { %430 = vset.pattern.permute.xlu0 %v492_v33 }
  0x21   :  { %379 = vmatmul.msk.bf16.gmra.mxu0 %vm113_vm0, %v373_v19  ;;  %189 = vperm.xlu0 %430, %v57_v4   ;;  %v393_v4 = vor.u32 %v410_v3, %v392_v2 }
  0x23   :  { %177 = vperm.xlu1 %428, %v541_v14   ;;  %181 = vperm.xlu2 %429, %v55_v7  }
  0x29   :  { %431 = vset.pattern.permute.xlu0 %v493_v20 }
  0x2a   :  { %279 = vperm.xlu0 %431, %v541_v14  }
  0x2b   :  { %169 = vperm.xlu1 %428, %v548_v15   ;;  %173 = vperm.xlu2 %429, %v555_v16  }
  0x31   :  { %380 = vmatmul.msk.bf16.gmra.mxu0 %vm113_vm0, %v377_v22 }
  0x33   :  { %432 = vset.pattern.permute.xlu1 %v493_v20  ;;  %433 = vset.pattern.permute.xlu2 %v493_v20 }
  0x34   :  { %271 = vperm.xlu1 %432, %v548_v15   ;;  %275 = vperm.xlu2 %433, %v555_v16  }
  0x63   :  { %v78_v38 = vpop.permute.xlu2 %77 }
  0x6c   :  { %v63_v48 = vpop.permute.xlu2 %62 }
  0x75   :  { %v186_v18 = vpop.permute.xlu2 %185 }
  0x7a   :  { %v93_v24 = vpop.permute.xlu0 %92 }
  0x7b   :  { %v88_v35 = vpop.permute.xlu1 %87 }
  0x7d   :  { %v182_v21 = vpop.permute.xlu2 %181 }
  0x82   :  { %v83_v36 = vpop.permute.xlu0 %82 }
  0x84   :  { %v73_v40 = vpop.permute.xlu1 %72 }
  0x8a   :  { %v68_v44 = vpop.permute.xlu0 %67 }
  0x8d   :  { %v194_v6 = vpop.permute.xlu1 %193 }
  0x8e   :  { %v138_v23 = vpop.f32.mrf.mxu0 }
  0x8f   :  { %v139_v52 = vadd.f32 %v138_v23, %v63_v48  ;;  %v494_v48 = vmov 3  }
  0x90   :  { %434 = vset.pattern.permute.xlu1 %v494_v48  ;;  %435 = vset.pattern.permute.xlu0 %v494_v48 }
  0x91   :  { %v157_v57 = vmax.f32 %v139_v52, 0.0 }
  0x94   :  { %v153_v25 = vpop.f32.mrf.mxu2 }
  0x95   :  { %v154_v26 = vadd.f32 %v153_v25, %v93_v24  ;;  %v178_v23 = vpop.permute.xlu1 %177  ;;  %v190_v24 = vpop.permute.xlu0 %189 }
  0x96   :  { %v140_v27 = vpop.f32.mrf.mxu0 }
  0x97   :  { %v163_v28 = vmax.f32 %v154_v26, 0.0  ;;  %v141_v49 = vadd.f32 %v140_v27, %v68_v44 }
  0x99   :  { %v167_v29 = vpack.c.bf16 %v163_v28, %v163_v28  ;;  %v158_v54 = vmax.f32 %v141_v49, 0.0 }
  0x9b   :  { %v229_v30 = vsel %vm227_vm1, %v167_v29, 0  ;;  %v164_v60 = vpack.c.bf16 %v158_v54, %v157_v57  ;;  %v174_v29 = vpop.permute.xlu2 %173 }
  0x9c   :  { %v155_v31 = vpop.f32.mrf.mxu2  ;;  %235 = vmatpush.bf16.msra.mxu1 %v229_v30  ;;  %413 = vmatpush.bf16.msra.mxu3 %v229_v30 }
  0x9d   :  { %v170_v33 = vpop.permute.xlu1 %169 }
  0x9e   :  { %v143_v32 = vpop.f32.mrf.mxu0 }
  0x9f   :  { %v144_v45 = vadd.f32 %v143_v32, %v73_v40  ;;  %v411_v40 = vld [vmem:[#allocation2 + $0x14] sm:$0xf0] }
  0xa1   :  { %v159_v53 = vmax.f32 %v144_v45, 0.0 }
  0xa6   :  { %v145_v34 = vpop.f32.mrf.mxu0 }
  0xa7   :  { %v146_v42 = vadd.f32 %v145_v34, %v78_v38 }
  0xa9   :  { %v160_v50 = vmax.f32 %v146_v42, 0.0 }
  0xab   :  { %v165_v55 = vpack.c.bf16 %v160_v50, %v159_v53  ;;  %v280_v50 = vpop.permute.xlu0 %279  ;;  %v272_v53 = vpop.permute.xlu1 %271 }
  0xae   :  { %v148_v37 = vpop.f32.mrf.mxu0 }
  0xaf   :  { %v149_v39 = vadd.f32 %v148_v37, %v83_v36 }
  0xb1   :  { %v161_v46 = vmax.f32 %v149_v39, 0.0  ;;  %v400_v39 = vld [vmem:[#allocation2 + $0x8] sm:$0xf] }
  0xb2   :  { %v401_v42 = vor.u32 %v411_v40, %v400_v39 }
  0xb6   :  { %v150_v41 = vpop.f32.mrf.mxu0 }
  0xb7   :  { %v151_v43 = vadd.f32 %v150_v41, %v88_v35 }
  0xb9   :  { %v162_v47 = vmax.f32 %v151_v43, 0.0  ;;  %v50_v43 = vld [vmem:[#allocation2 + $0x28] sm:$0xf] }
  0xba   :  { %v287_v44 = vunpack.c.l.b16 %v50_v43 }
  0xbb   :  { %v166_v51 = vpack.c.bf16 %v162_v47, %v161_v46  ;;  %v59_v46 = vld [vmem:[%s584_s2] sm:$0x1]  ;;  %s495_s2 = smov [#allocation5]  }
  0xbc   :  { %v289_v45 = vpack.c.b16 %v287_v44, %v287_v44  ;;  %324 = vperm.xlu1 %434, %v59_v46   ;;  %s354_s8 = sshll.u32 %s495_s2, 4  ;;  %s355_s8 = int_to_ptr.vmem [resolvable:$true] %s354_s8 }
  0xbd   :  { %236 = vmatpush.bf16.msra.mxu1 %v166_v51  ;;  %414 = vmatpush.bf16.msra.mxu3 %v166_v51  ;;  %v276_v51 = vpop.permute.xlu2 %275 }
  0xc1   :  { %237 = vmatpush.bf16.msra.mxu1 %v165_v55  ;;  %415 = vmatpush.bf16.msra.mxu3 %v165_v55 }
  0xc5   :  { %238 = vmatpush.bf16.msra.mxu1 %v164_v60  ;;  %416 = vmatpush.bf16.msra.mxu3 %v164_v60 }
  0xc8   :  { %394 = vmatmul.msk.bf16.vlgmr.msra.gmra.mxu1 %vm214_vm2, %v385_v61  ;;  %397 = vmatmul.msk.bf16.vlgmr.msra.gmra.mxu3 %vm214_vm2, %v213_v62 }
  0xd8   :  { %395 = vmatmul.msk.bf16.gmra.mxu1 %vm214_vm2, %v389_v1 }
  0xe8   :  { %396 = vmatmul.msk.bf16.gmra.mxu1 %vm214_vm2, %v393_v4 }
 0x12e   :  { %v325_v1 = vpop.permute.xlu1 %324 }
 0x145   :  { %v240_v5 = vpop.f32.mrf.mxu1 }
 0x146   :  { %v241_v14 = vadd.f32 %v240_v5, %v170_v33 }
 0x148   :  { %v259_v38 = vmax.f32 %v241_v14, 0.0 }
 0x14b   :  { %v255_v7 = vpop.f32.mrf.mxu3 }
 0x14c   :  { %v256_v8 = vadd.f32 %v255_v7, %v194_v6 }
 0x14d   :  { %v242_v9 = vpop.f32.mrf.mxu1 }
 0x14e   :  { %v265_v10 = vmax.f32 %v256_v8, 0.0  ;;  %v243_v34 = vadd.f32 %v242_v9, %v174_v29 }
 0x150   :  { %v269_v11 = vpack.c.bf16 %v265_v10, %v265_v10  ;;  %v260_v16 = vmax.f32 %v243_v34, 0.0 }
 0x152   :  { %v297_v12 = vsel %vm227_vm1, %v269_v11, 0  ;;  %v266_v41 = vpack.c.bf16 %v260_v16, %v259_v38 }
 0x153   :  { %v257_v13 = vpop.f32.mrf.mxu3  ;;  %303 = vmatpush.bf16.msrb.mxu2 %v297_v12 }
 0x155   :  { %v245_v17 = vpop.f32.mrf.mxu1 }
 0x156   :  { %v246_v30 = vadd.f32 %v245_v17, %v178_v23 }
 0x158   :  { %v261_v36 = vmax.f32 %v246_v30, 0.0 }
 0x15d   :  { %v247_v19 = vpop.f32.mrf.mxu1 }
 0x15e   :  { %v248_v27 = vadd.f32 %v247_v19, %v182_v21 }
 0x160   :  { %v262_v15 = vmax.f32 %v248_v27, 0.0 }
 0x162   :  { %v267_v37 = vpack.c.bf16 %v262_v15, %v261_v36 }
 0x165   :  { %v250_v22 = vpop.f32.mrf.mxu1 }
 0x166   :  { %v251_v25 = vadd.f32 %v250_v22, %v186_v18 }
 0x168   :  { %v263_v31 = vmax.f32 %v251_v25, 0.0 }
 0x16d   :  { %v252_v26 = vpop.f32.mrf.mxu1 }
 0x16e   :  { %v253_v28 = vadd.f32 %v252_v26, %v190_v24 }
 0x170   :  { %v264_v32 = vmax.f32 %v253_v28, 0.0 }
 0x172   :  { %v268_v35 = vpack.c.bf16 %v264_v32, %v263_v31 }
 0x174   :  { %304 = vmatpush.bf16.msrb.mxu2 %v268_v35 }
 0x178   :  { %305 = vmatpush.bf16.msrb.mxu2 %v267_v37 }
 0x17c   :  { %306 = vmatpush.bf16.msrb.mxu2 %v266_v41 }
 0x17f   :  { %402 = vmatmul.msk.bf16.vlgmr.msrb.gmra.mxu2 %vm214_vm2, %v401_v42 }
 0x18f   :  { %403 = vmatmul.msk.bf16.gmra.mxu2 %vm214_vm2, %v289_v45 }
 0x202   :  { %v308_v47 = vpop.f32.mrf.mxu2 }
 0x203   :  { %v309_v57 = vadd.f32 %v308_v47, %v272_v53 }
 0x205   :  { %v317_v61 = vmax.f32 %v309_v57, 0.0 }
 0x20a   :  { %v310_v49 = vpop.f32.mrf.mxu2 }
 0x20b   :  { %v311_v55 = vadd.f32 %v310_v49, %v276_v51 }
 0x20d   :  { %v318_v59 = vmax.f32 %v311_v55, 0.0 }
 0x20f   :  { %v320_v63 = vpack.c.bf16 %v318_v59, %v317_v61 }
 0x212   :  { %v313_v52 = vpop.f32.mrf.mxu2 }
 0x213   :  { %v314_v54 = vadd.f32 %v313_v52, %v280_v50 }
 0x215   :  { %v319_v56 = vmax.f32 %v314_v54, 0.0 }
 0x217   :  { %v321_v58 = vpack.c.bf16 %v319_v56, %v319_v56 }
 0x219   :  { %v332_v60 = vsel %vm227_vm1, %v321_v58, 0 }
 0x21a   :  { %v315_v62 = vpop.f32.mrf.mxu2  ;;  %340 = vmatpush.bf16.msrb.mxu3 %v332_v60 }
 0x21e   :  { %341 = vmatpush.bf16.msrb.mxu3 %v320_v63 }
 0x221   :  { %404 = vmatmul.msk.bf16.vlgmr.msrb.gmra.mxu3 %vm327_vm3, %v51_v0 }
 0x2a4   :  { %v343_v2 = vpop.f32.mrf.mxu3 }
 0x2a5   :  { %v344_v3 = vadd.f32 %v343_v2, %v325_v1 }
 0x2a7   :  { %348 = vst.msk [vmem:[#allocation5] sm:$0x1] %vm347_vm4, %v344_v3 }
 0x2a8   :  { %359 = dma.vmem_to_hbm [thread:$0]  %s355_s8, 16, %s357_s11, [#allocation4]  }
 0x2ac   :  { %v345_v4 = vpop.f32.mrf.mxu3 }
 0x2ad   :  { %486 = dma.done.wait [#allocation4], 16  }
 0x2ae   :  { %487 = vsyncadd [#allocation4], 4294967280 }
 0x2af   :  { %364 = vsyncpa [#allocation3], 1 }
 0x2b0   :  { %365 = vsyncpa [#allocation4], 1 }

</bundles_post_ra>
